<compile_context>
chip_gen: v7x
topology: tpu7x:2x2x1
jax: 0.10.0
libtpu: 0.0.40
codegen_flags: <defaults>
</compile_context>

<pallas_src>
import jax
import jax.numpy as jnp
from jax.experimental import pallas as pl
from jax.experimental.pallas import tpu as pltpu


# ---------------------------------------------------------------------------
# Config (synthetic, mirrors SHINEConfig fields used by __init__)
# ---------------------------------------------------------------------------
FEATURE_DIM = 8          # config.feature_dim          (sdf_feature width)
COLOR_FEATURE_DIM = 8    # config.color_feature_dim    (color_feature width)
MLP_HIDDEN_DIM = 32      # config.geo_mlp_hidden_dim
MLP_LEVEL = 2            # config.geo_mlp_level  (this kernel hard-codes 2)
MLP_BIAS_ON = True       # config.geo_mlp_bias_on

N_POINTS = 512           # number of query points (batch)

_F = FEATURE_DIM
_C = COLOR_FEATURE_DIM
_H = MLP_HIDDEN_DIM

# ---------------------------------------------------------------------------
# Slab / activation layout constants
# ---------------------------------------------------------------------------
_IN_ROWS = _F + _C + 1                 # input rows: [x ; cf ; 1]           = 17
_ONES_IN = _F + _C                     # index of the constant-1 input row  = 16
_RA = ((_H + 1 + 7) // 8) * 8          # 8-aligned augmented block height   = 40
_ONES_A = _H                           # carried constant-1 channel row/col = 32
_ROW_SDF_P = _H                        # +sdf row inside block C
_ROW_SDF_N = _H + 1                    # -sdf row inside block C
_ROW_ONE_C = _H + 2                    # carried-1 row inside block C / z

_R_A = 0                               # layer 0 (augmented)        rows [0, 40)
_R_B = _RA                             # layer 1 (augmented)        rows [40, 80)
_R_C = 2 * _RA                         # color_layer(h) + sdf +/-   rows [80, 120)
_R_D = 3 * _RA                         # final combiner (4 rows)    rows [120, 128)
_R_CF = 3 * _RA + 8                    # color_layer(cf part)       rows [128, 168)
_SLAB_ROWS = _R_CF + _RA               # 168
_SLAB_COLS = 128


def _num_tensorcores():
    """Best-effort TC count: v7x has 2 TensorCores/chip, v5e/v6e have 1."""
    try:
        kind = jax.devices()[0].device_kind.lower()
    except Exception:
        return 1
    return 2 if "v7" in kind else 1


# ---------------------------------------------------------------------------
# Pallas kernel (channel-major: activations are [channels, TILE_N])
# ---------------------------------------------------------------------------
def _decoder_kernel(x_ref, w_ref, out_ref):
    F, C, RA = _F, _C, _RA

    x = x_ref[...]                                      # (F+C+1, T): [x ; cf ; 1]

    # trunk MLP, 2 layers; biases + constant-1 carry are folded into the weights
    a = jnp.dot(w_ref[_R_A:_R_A + RA, 0:_IN_ROWS], x,
                preferred_element_type=jnp.float32)
    a = jnp.maximum(a, 0.0)                             # (RA, T): [h0 ; 1 ; 0pad]
    a = jnp.dot(w_ref[_R_B:_R_B + RA, 0:RA], a,
                preferred_element_type=jnp.float32)
    a = jnp.maximum(a, 0.0)                             # (RA, T): [h  ; 1 ; 0pad]

    # fused color_layer + sdf head: two accumulating dots (no concatenate)
    sc = jnp.dot(w_ref[_R_C:_R_C + RA, 0:RA], a,
                 preferred_element_type=jnp.float32)
    sc = sc + jnp.dot(w_ref[_R_CF:_R_CF + RA, 0:C], x[F:F + C, :],
                      preferred_element_type=jnp.float32)
    z = jnp.maximum(sc, 0.0)           # [cfeat ; relu(sdf) ; relu(-sdf) ; 1 ; 0pad]

    # fused color_out + sdf reconstruction:  sdf = relu(s) - relu(-s) = s
    out = jnp.dot(w_ref[_R_D:_R_D + 4, 0:RA], z,
                  preferred_element_type=jnp.float32)
    out_ref[...] = out.astype(out_ref.dtype)            # row 0 = sdf, rows 1:4 = color


# ---------------------------------------------------------------------------
# Weight slab packing (wrapper side, plain XLA)
# ---------------------------------------------------------------------------
def pack_weight_slab(p):
    """Pack all weights/biases into one (168, 128) f32 slab, channel-major [out, in]."""
    F, C, H = _F, _C, _H

    # Static layout sanity checks (guards against silent overlap if dims change).
    assert MLP_LEVEL == 2, "slab packing hard-codes geo_mlp_level == 2"
    assert _H + 3 <= _RA                       # room for sdf+, sdf-, carried-1 rows
    assert _IN_ROWS <= _SLAB_COLS and _RA <= _SLAB_COLS and C <= _SLAB_COLS
    assert _ONES_IN >= F + C - 1 and _ONES_IN == F + C   # bias col beyond weight cols
    assert _ONES_A == H                                   # bias col beyond weight cols
    assert _R_A % 8 == 0 and _R_B % 8 == 0 and _R_C % 8 == 0
    assert _R_D % 8 == 0 and _R_CF % 8 == 0 and _SLAB_ROWS % 8 == 0
    assert _R_D + 4 <= _R_CF
    assert p["w0"].shape == (H, F) and p["w1"].shape == (H, H)
    assert p["wc"].shape == (H, H + C) and p["wco"].shape == (3, H)
    assert p["wsdf"].shape == (1, H)

    slab = jnp.zeros((_SLAB_ROWS, _SLAB_COLS), jnp.float32)

    # Block A -- layer 0 (bias folded into col _ONES_IN; row _ONES_A carries the 1).
    slab = slab.at[_R_A:_R_A + H, 0:F].set(p["w0"])
    slab = slab.at[_R_A:_R_A + H, _ONES_IN].set(p["b0"])
    slab = slab.at[_R_A + _ONES_A, _ONES_IN].set(1.0)

    # Block B -- layer 1 (bias folded; constant-1 carried forward).
    slab = slab.at[_R_B:_R_B + H, 0:H].set(p["w1"])
    slab = slab.at[_R_B:_R_B + H, _ONES_A].set(p["b1"])
    slab = slab.at[_R_B + _ONES_A, _ONES_A].set(1.0)

    # Block C -- color_layer (h part) + sdf head as +/- rows + constant-1 carry.
    slab = slab.at[_R_C:_R_C + H, 0:H].set(p["wc"][:, 0:H])
    slab = slab.at[_R_C:_R_C + H, _ONES_A].set(p["bc"])
    slab = slab.at[_R_C + _ROW_SDF_P, 0:H].set(p["wsdf"][0])
    slab = slab.at[_R_C + _ROW_SDF_P, _ONES_A].set(p["bsdf"][0])
    slab = slab.at[_R_C + _ROW_SDF_N, 0:H].set(-p["wsdf"][0])
    slab = slab.at[_R_C + _ROW_SDF_N, _ONES_A].set(-p["bsdf"][0])
    slab = slab.at[_R_C + _ROW_ONE_C, _ONES_A].set(1.0)

    # Block CF -- color_layer weight over color_feature (second accumulating dot).
    slab = slab.at[_R_CF:_R_CF + H, 0:C].set(p["wc"][:, H:H + C])

    # Block D -- final combiner: row 0 = sdf pass-through (+1/-1), rows 1:4 = color_out.
    slab = slab.at[_R_D, _ROW_SDF_P].set(1.0)
    slab = slab.at[_R_D, _ROW_SDF_N].set(-1.0)
    slab = slab.at[_R_D + 1:_R_D + 4, 0:H].set(p["wco"])
    slab = slab.at[_R_D + 1:_R_D + 4, _ROW_ONE_C].set(p["bco"])
    return slab


# ---------------------------------------------------------------------------
# Wrapper
# ---------------------------------------------------------------------------
def color_sdf_decoder_forward(sdf_feature, color_feature, params, tile_n=None):
    """sdf_feature: (N, F) f32, color_feature: (N, C) f32 -> (sdf (N,), color (N, 3))."""
    N, F = sdf_feature.shape
    _, C = color_feature.shape
    assert F == _F and C == _C

    # Single channel-major input slab [x ; cf ; 1]: one DMA stream per step and
    # one XLA relayout instead of two.
    # TODO(synk): ideally the upstream feature op would emit this (F+C+1, N)
    #             channel-major layout directly and skip the transpose entirely.
    ones = jnp.ones((N, 1), jnp.float32)
    x_cm = jnp.concatenate(
        [sdf_feature.astype(jnp.float32), color_feature.astype(jnp.float32), ones],
        axis=1).T                                           # (F+C+1, N)

    slab = pack_weight_slab(params)

    # Grid: one big step on single-TC chips (v5e/v6e); two steps (one per TC)
    # on v7x so both TensorCores are used via "parallel" semantics.
    if tile_n is None:
        n_tc = _num_tensorcores()
        tile_n = N // n_tc if (n_tc > 1 and N % (128 * n_tc) == 0) else N
    assert N % tile_n == 0 and tile_n % 128 == 0, \
        "N must be a multiple of 128 * grid_steps for this synthetic kernel"
    grid = (N // tile_n,)

    flops = 2 * N * (_RA * _IN_ROWS + 2 * _RA * _RA + _RA * _C + 4 * _RA)
    bytes_accessed = 4 * ((_IN_ROWS + 4) * N + _SLAB_ROWS * _SLAB_COLS)

    out = pl.pallas_call(
        _decoder_kernel,
        out_shape=jax.ShapeDtypeStruct((4, N), jnp.float32),
        grid_spec=pltpu.PrefetchScalarGridSpec(
            num_scalar_prefetch=0,
            grid=grid,
            in_specs=[
                pl.BlockSpec((_IN_ROWS, tile_n), lambda i: (0, i)),        # fused features
                pl.BlockSpec((_SLAB_ROWS, _SLAB_COLS), lambda i: (0, 0)),  # resident weights
            ],
            out_specs=pl.BlockSpec((4, tile_n), lambda i: (0, i)),
        ),
        compiler_params=pltpu.CompilerParams(
            dimension_semantics=("parallel",),
        ),
        cost_estimate=pl.CostEstimate(
            flops=flops, transcendentals=0, bytes_accessed=bytes_accessed),
    )(x_cm, slab)

    sdf = out[0, :]               # .squeeze(1) semantics
    color = out[1:4, :].T         # (N, 3)
    return sdf, color


# ---------------------------------------------------------------------------
# Deterministic parameter init (mimics nn.Linear uniform init; [out, in] layout)
# ---------------------------------------------------------------------------
def init_params(key):
    F, C, H = _F, _C, _H

    def linear(key, fan_in, fan_out):
        kw, kb = jax.random.split(key)
        bound = 1.0 / jnp.sqrt(fan_in)
        w = jax.random.uniform(kw, (fan_out, fan_in), jnp.float32, -bound, bound)
        b = jax.random.uniform(kb, (fan_out,), jnp.float32, -bound, bound)
        if not MLP_BIAS_ON:
            b = jnp.zeros((fan_out,), jnp.float32)
        return w, b

    keys = jax.random.split(key, 5)
    w0, b0 = linear(keys[0], F, H)            # layers[0]
    w1, b1 = linear(keys[1], H, H)            # layers[1]
    wsdf, bsdf = linear(keys[2], H, 1)        # sdf_out
    wc, bc = linear(keys[3], H + C, H)        # color_layer (input = concat(h, cf))
    wco, bco = linear(keys[4], H, 3)          # color_out
    return {
        "w0": w0, "b0": b0,
        "w1": w1, "b1": b1,
        "wsdf": wsdf, "bsdf": bsdf,
        "wc": wc, "bc": bc,
        "wco": wco, "bco": bco,
    }


# ---------------------------------------------------------------------------
# Pure-JAX reference (point-major, mirrors the PyTorch forward)
# ---------------------------------------------------------------------------
def reference_forward(sdf_feature, color_feature, p):
    h = jnp.maximum(sdf_feature @ p["w0"].T + p["b0"], 0.0)
    h = jnp.maximum(h @ p["w1"].T + p["b1"], 0.0)
    sdf = (h @ p["wsdf"].T + p["bsdf"])[:, 0]
    hc = jnp.concatenate([h, color_feature], axis=1)
    cfeat = jnp.maximum(hc @ p["wc"].T + p["bc"], 0.0)
    color = cfeat @ p["wco"].T + p["bco"]
    return sdf, color


if __name__ == "__main__":
    key = jax.random.PRNGKey(0)
    kp, kx, kc = jax.random.split(key, 3)

    params = init_params(kp)
    sdf_feature = jax.random.normal(kx, (N_POINTS, FEATURE_DIM), jnp.float32)
    color_feature = jax.random.normal(kc, (N_POINTS, COLOR_FEATURE_DIM), jnp.float32)

    sdf, color = color_sdf_decoder_forward(sdf_feature, color_feature, params)
    jax.block_until_ready((sdf, color))

    sdf_ref, color_ref = reference_forward(sdf_feature, color_feature, params)
    assert sdf.shape == (N_POINTS,)
    assert color.shape == (N_POINTS, 3)
    assert jnp.allclose(sdf, sdf_ref, atol=1e-4, rtol=1e-4)
    assert jnp.allclose(color, color_ref, atol=1e-4, rtol=1e-4)

    print("KERNEL_OK")
</pallas_src>

<mosaic_0001>
module attributes {stable_mosaic.version = 11 : i64} {
  func.func @_decoder_kernel(%arg0: i32, %arg1: memref<17x512xf32, #tpu.memory_space<vmem>>, %arg2: memref<168x128xf32, #tpu.memory_space<vmem>>, %arg3: memref<4x512xf32, #tpu.memory_space<vmem>>) attributes {dimension_semantics = [#tpu.dimension_semantics<parallel>], iteration_bounds = array<i64: 1>, scalar_prefetch = 0 : i64, scratch_operands = 0 : i64, tpu.core_type = #tpu.core_type<tc>, window_params = [{transform_indices = @transform_0, window_bounds = array<i64: 17, 512>}, {pipeline_mode = #tpu.pipeline_mode<synchronous>, transform_indices = @transform_1, window_bounds = array<i64: 168, 128>}, {transform_indices = @transform_2, window_bounds = array<i64: 4, 512>}]} {
    %c0 = arith.constant 0 : index
    %c0_0 = arith.constant 0 : index
    %0 = vector.load %arg1[%c0, %c0_0] : memref<17x512xf32, #tpu.memory_space<vmem>>, vector<17x512xf32>
    %c0_1 = arith.constant 0 : index
    %c0_2 = arith.constant 0 : index
    %1 = vector.load %arg2[%c0_1, %c0_2] : memref<168x128xf32, #tpu.memory_space<vmem>>, vector<40x17xf32>
    %cst = arith.constant dense<0.000000e+00> : vector<40x512xf32>
    %2 = tpu.matmul %1, %0, %cst {dimension_numbers = #tpu.dot_dimension_numbers<[1], [0], [0], [1], [0, 0, 1, 1], [], []>} : vector<40x17xf32>, vector<17x512xf32>, vector<40x512xf32> -> vector<40x512xf32>
    %cst_3 = arith.constant 0.000000e+00 : f32
    %3 = vector.broadcast %cst_3 : f32 to vector<40x512xf32>
    %4 = arith.maximumf %2, %3 : vector<40x512xf32>
    %c40 = arith.constant 40 : index
    %c0_4 = arith.constant 0 : index
    %5 = vector.load %arg2[%c40, %c0_4] : memref<168x128xf32, #tpu.memory_space<vmem>>, vector<40x40xf32>
    %cst_5 = arith.constant dense<0.000000e+00> : vector<40x512xf32>
    %6 = tpu.matmul %5, %4, %cst_5 {dimension_numbers = #tpu.dot_dimension_numbers<[1], [0], [0], [1], [0, 0, 1, 1], [], []>} : vector<40x40xf32>, vector<40x512xf32>, vector<40x512xf32> -> vector<40x512xf32>
    %cst_6 = arith.constant 0.000000e+00 : f32
    %7 = vector.broadcast %cst_6 : f32 to vector<40x512xf32>
    %8 = arith.maximumf %6, %7 : vector<40x512xf32>
    %c80 = arith.constant 80 : index
    %c0_7 = arith.constant 0 : index
    %9 = vector.load %arg2[%c80, %c0_7] : memref<168x128xf32, #tpu.memory_space<vmem>>, vector<40x40xf32>
    %cst_8 = arith.constant dense<0.000000e+00> : vector<40x512xf32>
    %10 = tpu.matmul %9, %8, %cst_8 {dimension_numbers = #tpu.dot_dimension_numbers<[1], [0], [0], [1], [0, 0, 1, 1], [], []>} : vector<40x40xf32>, vector<40x512xf32>, vector<40x512xf32> -> vector<40x512xf32>
    %c128 = arith.constant 128 : index
    %c0_9 = arith.constant 0 : index
    %11 = vector.load %arg2[%c128, %c0_9] : memref<168x128xf32, #tpu.memory_space<vmem>>, vector<40x8xf32>
    %12 = vector.extract_strided_slice %0 {offsets = [8, 0], sizes = [8, 512], strides = [1, 1]} : vector<17x512xf32> to vector<8x512xf32>
    %cst_10 = arith.constant dense<0.000000e+00> : vector<40x512xf32>
    %13 = tpu.matmul %11, %12, %cst_10 {dimension_numbers = #tpu.dot_dimension_numbers<[1], [0], [0], [1], [0, 0, 1, 1], [], []>} : vector<40x8xf32>, vector<8x512xf32>, vector<40x512xf32> -> vector<40x512xf32>
    %14 = arith.addf %10, %13 : vector<40x512xf32>
    %cst_11 = arith.constant 0.000000e+00 : f32
    %15 = vector.broadcast %cst_11 : f32 to vector<40x512xf32>
    %16 = arith.maximumf %14, %15 : vector<40x512xf32>
    %c120 = arith.constant 120 : index
    %c0_12 = arith.constant 0 : index
    %17 = vector.load %arg2[%c120, %c0_12] : memref<168x128xf32, #tpu.memory_space<vmem>>, vector<4x40xf32>
    %cst_13 = arith.constant dense<0.000000e+00> : vector<4x512xf32>
    %18 = tpu.matmul %17, %16, %cst_13 {dimension_numbers = #tpu.dot_dimension_numbers<[1], [0], [0], [1], [0, 0, 1, 1], [], []>} : vector<4x40xf32>, vector<40x512xf32>, vector<4x512xf32> -> vector<4x512xf32>
    %c0_14 = arith.constant 0 : index
    %c0_15 = arith.constant 0 : index
    %19 = vector.load %arg3[%c0_14, %c0_15] : memref<4x512xf32, #tpu.memory_space<vmem>>, vector<4x512xf32>
    tpu.vector_store %arg3[%c0_14, %c0_15], %18 {strides = array<i32>} : memref<4x512xf32, #tpu.memory_space<vmem>>, vector<4x512xf32>,
    return
  }
  func.func @transform_0(%arg0: i32) -> (i32, i32) {
    %c0_i32 = arith.constant 0 : i32
    %c0_i32_0 = arith.constant 0 : i32
    return %c0_i32, %arg0 : i32, i32
  }
  func.func @transform_1(%arg0: i32) -> (i32, i32) {
    %c0_i32 = arith.constant 0 : i32
    %c0_i32_0 = arith.constant 0 : i32
    %c0_i32_1 = arith.constant 0 : i32
    return %c0_i32, %c0_i32_0 : i32, i32
  }
  func.func @transform_2(%arg0: i32) -> (i32, i32) {
    %c0_i32 = arith.constant 0 : i32
    %c0_i32_0 = arith.constant 0 : i32
    return %c0_i32, %arg0 : i32, i32
  }
}

</mosaic_0001>

<bundles_post_ra>
// kernel: tpu_custom_call.1
= control target key start
LH: loop header
LB: loop body
LE: loop exit
PB: predicated region body
PF: predicated region fallthrough
CT: control target
= control target key end

     0   :  { %7 = vsyncpa [#allocation3], 0  ;;  %s1501_s0 = inlined_call_operand.hbm [shape: f32[17,512], index: 0, kind: input, shape index: {}]   ;;  %s1502_s1 = inlined_call_operand.hbm [shape: f32[168,128], index: 1, kind: input, shape index: {}]   ;;  %s1503_s2 = inlined_call_operand.hbm [shape: f32[4,512], index: 2, kind: output, shape index: {}]  }
   0x1   :  { %8 = vsyncpa [#allocation6], 0 }
   0x2   :  { %9 = vsyncpa [#allocation4], 0  ;;  %s1342_s9 = smov [#allocation2]   ;;  %s1270_s13 = scalar_lea.hbm %s1501_s0, 1536 }
   0x3   :  { %s15_s10 = sshll.u32 %s1342_s9, 4  ;;  %p1271_p0 = scmp.ne.s32.totalorder %s1501_s0, %s1270_s13  ;;  %s16_s10 = int_to_ptr.vmem [resolvable:$true] %s15_s10 }
   0x4   :  { %p1274_p1 = scmp.lt.u32.totalorder %s1270_s13, %s1501_s0 }
   0x6   :  { %p1276_p2 = pnand %p1274_p1, %p1271_p0 }
   0x8   :  { %1279 = shalt.err (!%p1276_p2)
}
   0x9   :  { %s1280_s18 = scalar_lea.vmem %s16_s10, 1536  ;;  %p1285_p4 = scmp.lt.s32.totalorder %s16_s10, %s16_s10 }
   0xa   :  { %p1281_p3 = scmp.ne.s32.totalorder %s16_s10, %s1280_s18  ;;  %p1286_p5 = scmp.lt.s32.totalorder %s1280_s18, %s1280_s18 }
   0xc   :  { %p1287_p6 = por %p1286_p5, %p1285_p4 }
   0xe   :  { %p1288_p7 = pnand %p1287_p6, %p1281_p3 }
  0x10   :  { %1291 = shalt.err (!%p1288_p7)
}
  0x11   :  { %s1343_s19 = smov 512   ;;  %s1344_s20 = smov 32  }
  0x12   :  { %21 = dma.hbm_to_vmem [thread:$0]  %s1501_s0, 1536, %s16_s10, [#allocation3], %s1343_s19, %s1343_s19, %s1344_s20  }
  0x13   :  { %s1345_s23 = smov [#allocation5]   ;;  %s1292_s27 = scalar_lea.hbm %s1502_s1, 2688 }
  0x14   :  { %s27_s24 = sshll.u32 %s1345_s23, 4  ;;  %p1293_p8 = scmp.ne.s32.totalorder %s1502_s1, %s1292_s27  ;;  %s28_s24 = int_to_ptr.vmem [resolvable:$true] %s27_s24 }
  0x15   :  { %p1296_p9 = scmp.lt.u32.totalorder %s1292_s27, %s1502_s1 }
  0x17   :  { %p1298_p10 = pnand %p1296_p9, %p1293_p8 }
  0x19   :  { %1301 = shalt.err (!%p1298_p10)
}
  0x1a   :  { %s1302_s4 = scalar_lea.vmem %s28_s24, 2688  ;;  %p1307_p12 = scmp.lt.s32.totalorder %s28_s24, %s28_s24 }
  0x1b   :  { %p1303_p11 = scmp.ne.s32.totalorder %s28_s24, %s1302_s4  ;;  %p1308_p13 = scmp.lt.s32.totalorder %s1302_s4, %s1302_s4 }
  0x1d   :  { %p1309_p0 = por %p1308_p13, %p1307_p12 }
  0x1f   :  { %p1310_p1 = pnand %p1309_p0, %p1303_p11 }
  0x21   :  { %1313 = shalt.err (!%p1310_p1)
}
  0x22   :  { %s1346_s0 = smov 128   ;;  %s1347_s5 = smov 8  }
  0x23   :  { %33 = dma.hbm_to_vmem [thread:$0]  %s1502_s1, 2688, %s28_s24, [#allocation6], %s1346_s0, %s1346_s0, %s1347_s5  }
  0x24   :  { %1336 = dma.done.wait [#allocation3], 1536  }
  0x25   :  { %1337 = vsyncadd [#allocation3], 4294965760 }
  0x26   :  { %1338 = dma.done.wait [#allocation6], 2688  }
  0x27   :  { %1339 = vsyncadd [#allocation6], 4294964608  ;;  %v1348_v0 = vmov 0.0   ;;  %v41_v1 = vld [vmem:[#allocation2 + $0x8] sm:$0xff]  ;;  %v43_v3 = vld [vmem:[#allocation2 + $0x18] sm:$0xff]  ;;  %vm73_vm0 = vcmask 1040384  }
  0x28   :  { %150 = vmatprep.mubr.f32.mxu0 %v1348_v0  ;;  %245 = vmatprep.mubr.f32.mxu1 %v1348_v0  ;;  %v1391_v2 = vld [vmem:[#allocation2 + $0x28] sm:$0xff]  ;;  %v1394_v5 = vld [vmem:[#allocation2 + $0x38] sm:$0xff]  ;;  %v40_v6 = vld [vmem:[#allocation2] sm:$0xff]  ;;  %vm57_vm1 = vcmask 138240   ;;  %vm301_vm2 = vcmask 326656   ;;  %vm537_vm3 = vcmask 64512  }
  0x29   :  { %v1186_v4 = vpack.c.bf16 %v1391_v2, %v41_v1  ;;  %v1396_v7 = vld [vmem:[#allocation2 + $0x20] sm:$0xff]  ;;  %v1190_v8 = vpack.c.bf16 %v1394_v5, %v43_v3  ;;  %v42_v10 = vld [vmem:[#allocation2 + $0x10] sm:$0xff]  ;;  %v49_v12 = vld [vmem:[#allocation2 + $0x48] sm:$0x1]  ;;  %s1349_s1 = smov [#allocation7]  }
  0x2a   :  { %v1188_v9 = vpack.c.bf16 %v1396_v7, %v40_v6  ;;  %v1400_v11 = vld [vmem:[#allocation2 + $0x30] sm:$0xff]  ;;  %v51_v14 = vld [vmem:[#allocation2 + $0x58] sm:$0x1]  ;;  %v48_v15 = vld [vmem:[#allocation2 + $0x40] sm:$0x1]  ;;  %s1130_s8 = sshll.u32 %s1349_s1, 4  ;;  %s1131_s8 = int_to_ptr.vmem [resolvable:$true] %s1130_s8 }
  0x2b   :  { %1187 = vmatprep.subr.bf16.mxu0 %v1186_v4  ;;  %v1192_v13 = vpack.c.bf16 %v1400_v11, %v42_v10  ;;  %1191 = vmatprep.subr.bf16.mxu1 %v1190_v8  ;;  %v50_v16 = vld [vmem:[#allocation2 + $0x50] sm:$0x1]  ;;  %v52_v17 = vld [vmem:[#allocation5] sm:$0xff]  ;;  %v53_v18 = vld [vmem:[#allocation5 + $0x8] sm:$0xff]  ;;  %s1314_s9 = scalar_lea.vmem %s1131_s8, 256  ;;  %p1319_p3 = scmp.lt.s32.totalorder %s1131_s8, %s1131_s8 }
  0x2c   :  { %1189 = vmatpush1.bf16.msra.mxu0 %v1188_v9  ;;  %v54_v19 = vld [vmem:[#allocation5 + $0x10] sm:$0xff]  ;;  %v55_v20 = vld [vmem:[#allocation5 + $0x18] sm:$0xff]  ;;  %v56_v21 = vld [vmem:[#allocation5 + $0x20] sm:$0xff]  ;;  %p1315_p2 = scmp.ne.s32.totalorder %s1131_s8, %s1314_s9  ;;  %p1320_p4 = scmp.lt.s32.totalorder %s1314_s9, %s1314_s9 }
  0x2d   :  { %1193 = vmatpush1.bf16.msra.mxu1 %v1192_v13  ;;  %1140 = vmatprep.subr.msk.mxu0 %vm73_vm0, %v49_v12  ;;  %v296_v9 = vld [vmem:[#allocation5 + $0x28] sm:$0xff]  ;;  %v297_v12 = vld [vmem:[#allocation5 + $0x30] sm:$0xff]  ;;  %v298_v13 = vld [vmem:[#allocation5 + $0x38] sm:$0xff] }
  0x2e   :  { %1147 = vmatprep.subr.msk.mxu1 %vm73_vm0, %v51_v14  ;;  %v534_v14 = vld [vmem:[#allocation5 + $0x90] sm:$0xff]  ;;  %p1321_p5 = por %p1320_p4, %p1319_p3 }
  0x30   :  { %1141 = vmatpush1.msk.msra.mxu0 %vm73_vm0, %v48_v15  ;;  %v535_v15 = vld [vmem:[#allocation5 + $0x98] sm:$0xff]  ;;  %p1322_p6 = pnand %p1321_p5, %p1315_p2 }
  0x31   :  { %1148 = vmatpush1.msk.msra.mxu1 %vm73_vm0, %v50_v16  ;;  %1142 = vmatmul.mubr.msk.f32.vlgmr.msra.gmra.mrb[0].mxu0 %vm57_vm1, %v52_v17  ;;  %v536_v16 = vld [vmem:[#allocation5 + $0xa0] sm:$0xff] }
  0x32   :  { %1149 = vmatmul.mubr.msk.f32.vlgmr.msra.gmra.mrb[0].mxu1 %vm57_vm1, %v52_v17  ;;  %156 = vmatprep.mubr.f32.mxu0 %v1348_v0 }
  0x33   :  { %251 = vmatprep.mubr.f32.mxu1 %v1348_v0 }
  0x35   :  { %1143 = vmatmul.mubr.msk.f32.gmra.mrb[2].mxu0 %vm57_vm1, %v53_v18 }
  0x36   :  { %1150 = vmatmul.mubr.msk.f32.gmra.mrb[2].mxu1 %vm57_vm1, %v53_v18  ;;  %162 = vmatprep.mubr.f32.mxu0 %v1348_v0 }
  0x37   :  { %257 = vmatprep.mubr.f32.mxu1 %v1348_v0 }
  0x39   :  { %1144 = vmatmul.mubr.msk.f32.gmra.mrb[4].mxu0 %vm57_vm1, %v54_v19 }
  0x3a   :  { %1151 = vmatmul.mubr.msk.f32.gmra.mrb[4].mxu1 %vm57_vm1, %v54_v19  ;;  %168 = vmatprep.mubr.f32.mxu0 %v1348_v0 }
  0x3b   :  { %263 = vmatprep.mubr.f32.mxu1 %v1348_v0 }
  0x3d   :  { %1145 = vmatmul.mubr.msk.f32.gmra.mrb[6].mxu0 %vm57_vm1, %v55_v20 }
  0x3e   :  { %1152 = vmatmul.mubr.msk.f32.gmra.mrb[6].mxu1 %vm57_vm1, %v55_v20  ;;  %174 = vmatprep.mubr.f32.mxu0 %v1348_v0 }
  0x3f   :  { %269 = vmatprep.mubr.f32.mxu1 %v1348_v0 }
  0x41   :  { %1146 = vmatmul.mubr.msk.f32.gmra.mrb[8].mxu0 %vm57_vm1, %v56_v21 }
  0x42   :  { %1153 = vmatmul.mubr.msk.f32.gmra.mrb[8].mxu1 %vm57_vm1, %v56_v21  ;;  %381 = vmatprep.mubr.f32.mxu0 %v1348_v0 }
  0x43   :  { %476 = vmatprep.mubr.f32.mxu1 %v1348_v0 }
 0x104   :  { %v152_v22 = vpop.f32.mrb[0].mxu0 }
 0x105   :  { %v247_v23 = vpop.f32.mrb[0].mxu1  ;;  %v154_v24 = vpop.f32.mrb[1].mxu0  ;;  %v276_v27 = vmax.f32 %v152_v22, 0.0 }
 0x106   :  { %v249_v25 = vpop.f32.mrb[1].mxu1  ;;  %v278_v31 = vmax.f32 %v247_v23, 0.0  ;;  %v277_v32 = vmax.f32 %v154_v24, 0.0 }
 0x107   :  { %v279_v36 = vmax.f32 %v249_v25, 0.0 }
 0x108   :  { %v158_v26 = vpop.f32.mrb[2].mxu0 }
 0x109   :  { %v280_v28 = vmax.f32 %v158_v26, 0.0  ;;  %v253_v29 = vpop.f32.mrb[2].mxu1  ;;  %v160_v30 = vpop.f32.mrb[3].mxu0 }
 0x10a   :  { %v282_v33 = vmax.f32 %v253_v29, 0.0  ;;  %v281_v34 = vmax.f32 %v160_v30, 0.0  ;;  %v255_v35 = vpop.f32.mrb[3].mxu1 }
 0x10b   :  { %v1196_v37 = vpack.c.bf16 %v280_v28, %v276_v27  ;;  %v283_v38 = vmax.f32 %v255_v35, 0.0 }
 0x10c   :  { %v1204_v39 = vpack.c.bf16 %v282_v33, %v278_v31  ;;  %v1194_v40 = vpack.c.bf16 %v281_v34, %v277_v32  ;;  %v164_v41 = vpop.f32.mrb[4].mxu0 }
 0x10d   :  { %v1202_v42 = vpack.c.bf16 %v283_v38, %v279_v36  ;;  %v259_v43 = vpop.f32.mrb[4].mxu1  ;;  %v166_v44 = vpop.f32.mrb[5].mxu0  ;;  %v284_v47 = vmax.f32 %v164_v41, 0.0 }
 0x10e   :  { %v261_v45 = vpop.f32.mrb[5].mxu1  ;;  %1195 = vmatprep.subr.bf16.mxu0 %v1194_v40  ;;  %v286_v51 = vmax.f32 %v259_v43, 0.0  ;;  %v285_v52 = vmax.f32 %v166_v44, 0.0 }
 0x10f   :  { %1203 = vmatprep.subr.bf16.mxu1 %v1202_v42  ;;  %1197 = vmatpush1.bf16.msra.mxu0 %v1196_v37  ;;  %v287_v56 = vmax.f32 %v261_v45, 0.0 }
 0x110   :  { %1205 = vmatpush1.bf16.msra.mxu1 %v1204_v39  ;;  %v170_v46 = vpop.f32.mrb[6].mxu0 }
 0x111   :  { %v288_v48 = vmax.f32 %v170_v46, 0.0  ;;  %v265_v49 = vpop.f32.mrb[6].mxu1  ;;  %v172_v50 = vpop.f32.mrb[7].mxu0 }
 0x112   :  { %v290_v53 = vmax.f32 %v265_v49, 0.0  ;;  %v289_v54 = vmax.f32 %v172_v50, 0.0  ;;  %v267_v55 = vpop.f32.mrb[7].mxu1 }
 0x113   :  { %v1200_v57 = vpack.c.bf16 %v288_v48, %v284_v47  ;;  %v291_v58 = vmax.f32 %v267_v55, 0.0 }
 0x114   :  { %v1208_v59 = vpack.c.bf16 %v290_v53, %v286_v51  ;;  %v1198_v60 = vpack.c.bf16 %v289_v54, %v285_v52  ;;  %v176_v61 = vpop.f32.mrb[8].mxu0 }
 0x115   :  { %v1206_v62 = vpack.c.bf16 %v291_v58, %v287_v56  ;;  %v271_v63 = vpop.f32.mrb[8].mxu1  ;;  %v178_v1 = vpop.f32.mrb[9].mxu0  ;;  %v292_v8 = vmax.f32 %v176_v61, 0.0 }
 0x116   :  { %v293_v3 = vmax.f32 %v178_v1, 0.0  ;;  %v273_v4 = vpop.f32.mrb[9].mxu1  ;;  %1199 = vmatprep.subr.bf16.mxu0 %v1198_v60  ;;  %v294_v10 = vmax.f32 %v271_v63, 0.0  ;;  %v527_v1 = vld [vmem:[#allocation5 + $0x50] sm:$0xff] }
 0x117   :  { %v295_v6 = vmax.f32 %v273_v4, 0.0  ;;  %1207 = vmatprep.subr.bf16.mxu1 %v1206_v62  ;;  %1201 = vmatpush1.bf16.msra.mxu0 %v1200_v57  ;;  %v528_v4 = vld [vmem:[#allocation5 + $0x58] sm:$0xff] }
 0x118   :  { %1209 = vmatpush1.bf16.msra.mxu1 %v1208_v59  ;;  %325 = vmatprep.subr.mxu0 %v293_v3 }
 0x119   :  { %420 = vmatprep.subr.mxu1 %v295_v6  ;;  %v529_v6 = vld [vmem:[#allocation5 + $0x60] sm:$0xff] }
 0x11b   :  { %326 = vmatpush1.msra.mxu0 %v292_v8  ;;  %v530_v8 = vld [vmem:[#allocation5 + $0x68] sm:$0xff] }
 0x11c   :  { %421 = vmatpush1.msra.mxu1 %v294_v10  ;;  %1154 = vmatmul.mubr.msk.f32.vlgmr.msra.gmra.mrb[10].mxu0 %vm301_vm2, %v296_v9 }
 0x11d   :  { %1159 = vmatmul.mubr.msk.f32.vlgmr.msra.gmra.mrb[10].mxu1 %vm301_vm2, %v296_v9  ;;  %387 = vmatprep.mubr.f32.mxu0 %v1348_v0  ;;  %v531_v9 = vld [vmem:[#allocation5 + $0x70] sm:$0xff] }
 0x11e   :  { %482 = vmatprep.mubr.f32.mxu1 %v1348_v0  ;;  %553 = vmatprep.subr.mxu0 %v1391_v2  ;;  %v299_v2 = vld [vmem:[#allocation5 + $0x40] sm:$0xff] }
 0x11f   :  { %648 = vmatprep.subr.mxu1 %v1394_v5  ;;  %554 = vmatpush1.msra.mxu0 %v1396_v7  ;;  %v300_v5 = vld [vmem:[#allocation5 + $0x48] sm:$0xff]  ;;  %v532_v7 = vld [vmem:[#allocation5 + $0x80] sm:$0xff] }
 0x120   :  { %1155 = vmatmul.mubr.msk.f32.gmra.mrb[12].mxu0 %vm301_vm2, %v297_v12  ;;  %649 = vmatpush1.msra.mxu1 %v1400_v11  ;;  %v533_v11 = vld [vmem:[#allocation5 + $0x88] sm:$0xff] }
 0x121   :  { %1160 = vmatmul.mubr.msk.f32.gmra.mrb[12].mxu1 %vm301_vm2, %v297_v12  ;;  %393 = vmatprep.mubr.f32.mxu0 %v1348_v0 }
 0x122   :  { %488 = vmatprep.mubr.f32.mxu1 %v1348_v0 }
 0x124   :  { %1156 = vmatmul.mubr.msk.f32.gmra.mrb[14].mxu0 %vm301_vm2, %v298_v13 }
 0x125   :  { %1161 = vmatmul.mubr.msk.f32.gmra.mrb[14].mxu1 %vm301_vm2, %v298_v13  ;;  %399 = vmatprep.mubr.f32.mxu0 %v1348_v0 }
 0x126   :  { %494 = vmatprep.mubr.f32.mxu1 %v1348_v0 }
 0x128   :  { %1157 = vmatmul.mubr.msk.f32.gmra.mrb[16].mxu0 %vm301_vm2, %v299_v2 }
 0x129   :  { %1162 = vmatmul.mubr.msk.f32.gmra.mrb[16].mxu1 %vm301_vm2, %v299_v2  ;;  %405 = vmatprep.mubr.f32.mxu0 %v1348_v0 }
 0x12a   :  { %500 = vmatprep.mubr.f32.mxu1 %v1348_v0 }
 0x12c   :  { %1158 = vmatmul.mubr.msk.f32.gmra.mrb[18].mxu0 %vm301_vm2, %v300_v5 }
 0x12d   :  { %1163 = vmatmul.mubr.msk.f32.gmra.mrb[18].mxu1 %vm301_vm2, %v300_v5  ;;  %617 = vmatprep.mubr.f32.mxu0 %v1348_v0 }
 0x12e   :  { %712 = vmatprep.mubr.f32.mxu1 %v1348_v0 }
 0x130   :  { %1164 = vmatmul.mubr.msk.f32.vlgmr.msra.gmra.mrb[20].mxu0 %vm537_vm3, %v532_v7 }
 0x131   :  { %1169 = vmatmul.mubr.msk.f32.vlgmr.msra.gmra.mrb[20].mxu1 %vm537_vm3, %v532_v7  ;;  %623 = vmatprep.mubr.f32.mxu0 %v1348_v0 }
 0x132   :  { %718 = vmatprep.mubr.f32.mxu1 %v1348_v0 }
 0x134   :  { %1165 = vmatmul.mubr.msk.f32.gmra.mrb[22].mxu0 %vm537_vm3, %v533_v11 }
 0x135   :  { %1170 = vmatmul.mubr.msk.f32.gmra.mrb[22].mxu1 %vm537_vm3, %v533_v11  ;;  %629 = vmatprep.mubr.f32.mxu0 %v1348_v0 }
 0x136   :  { %724 = vmatprep.mubr.f32.mxu1 %v1348_v0 }
 0x138   :  { %1166 = vmatmul.mubr.msk.f32.gmra.mrb[24].mxu0 %vm537_vm3, %v534_v14 }
 0x139   :  { %1171 = vmatmul.mubr.msk.f32.gmra.mrb[24].mxu1 %vm537_vm3, %v534_v14  ;;  %635 = vmatprep.mubr.f32.mxu0 %v1348_v0 }
 0x13a   :  { %730 = vmatprep.mubr.f32.mxu1 %v1348_v0 }
 0x13c   :  { %1167 = vmatmul.mubr.msk.f32.gmra.mrb[26].mxu0 %vm537_vm3, %v535_v15 }
 0x13d   :  { %1172 = vmatmul.mubr.msk.f32.gmra.mrb[26].mxu1 %vm537_vm3, %v535_v15  ;;  %641 = vmatprep.mubr.f32.mxu0 %v1348_v0 }
 0x13e   :  { %736 = vmatprep.mubr.f32.mxu1 %v1348_v0 }
 0x140   :  { %1168 = vmatmul.mubr.msk.f32.gmra.mrb[28].mxu0 %vm537_vm3, %v536_v16 }
 0x141   :  { %1173 = vmatmul.mubr.msk.f32.gmra.mrb[28].mxu1 %vm537_vm3, %v536_v16  ;;  %822 = vmatprep.mubr.f32.mxu0 %v1348_v0 }
 0x142   :  { %917 = vmatprep.mubr.f32.mxu1 %v1348_v0 }
 0x1ef   :  { %v383_v17 = vpop.f32.mrb[10].mxu0 }
 0x1f0   :  { %v478_v18 = vpop.f32.mrb[10].mxu1  ;;  %v385_v19 = vpop.f32.mrb[11].mxu0  ;;  %v507_v22 = vmax.f32 %v383_v17, 0.0 }
 0x1f1   :  { %v480_v20 = vpop.f32.mrb[11].mxu1  ;;  %v509_v26 = vmax.f32 %v478_v18, 0.0  ;;  %v508_v27 = vmax.f32 %v385_v19, 0.0 }
 0x1f2   :  { %v510_v31 = vmax.f32 %v480_v20, 0.0 }
 0x1f3   :  { %v389_v21 = vpop.f32.mrb[12].mxu0 }
 0x1f4   :  { %v511_v23 = vmax.f32 %v389_v21, 0.0  ;;  %v484_v24 = vpop.f32.mrb[12].mxu1  ;;  %v391_v25 = vpop.f32.mrb[13].mxu0 }
 0x1f5   :  { %v513_v28 = vmax.f32 %v484_v24, 0.0  ;;  %v512_v29 = vmax.f32 %v391_v25, 0.0  ;;  %v486_v30 = vpop.f32.mrb[13].mxu1 }
 0x1f6   :  { %v1212_v32 = vpack.c.bf16 %v511_v23, %v507_v22  ;;  %v514_v33 = vmax.f32 %v486_v30, 0.0 }
 0x1f7   :  { %v1220_v34 = vpack.c.bf16 %v513_v28, %v509_v26  ;;  %v1210_v35 = vpack.c.bf16 %v512_v29, %v508_v27  ;;  %v395_v36 = vpop.f32.mrb[14].mxu0 }
 0x1f8   :  { %v1218_v37 = vpack.c.bf16 %v514_v33, %v510_v31  ;;  %v490_v38 = vpop.f32.mrb[14].mxu1  ;;  %v397_v39 = vpop.f32.mrb[15].mxu0  ;;  %v515_v42 = vmax.f32 %v395_v36, 0.0 }
 0x1f9   :  { %v492_v40 = vpop.f32.mrb[15].mxu1  ;;  %1211 = vmatprep.subr.bf16.mxu0 %v1210_v35  ;;  %v517_v46 = vmax.f32 %v490_v38, 0.0  ;;  %v516_v47 = vmax.f32 %v397_v39, 0.0 }
 0x1fa   :  { %1219 = vmatprep.subr.bf16.mxu1 %v1218_v37  ;;  %1213 = vmatpush1.bf16.msra.mxu0 %v1212_v32  ;;  %v518_v51 = vmax.f32 %v492_v40, 0.0 }
 0x1fb   :  { %1221 = vmatpush1.bf16.msra.mxu1 %v1220_v34  ;;  %v401_v41 = vpop.f32.mrb[16].mxu0 }
 0x1fc   :  { %v519_v43 = vmax.f32 %v401_v41, 0.0  ;;  %v496_v44 = vpop.f32.mrb[16].mxu1  ;;  %v403_v45 = vpop.f32.mrb[17].mxu0 }
 0x1fd   :  { %v521_v48 = vmax.f32 %v496_v44, 0.0  ;;  %v520_v49 = vmax.f32 %v403_v45, 0.0  ;;  %v498_v50 = vpop.f32.mrb[17].mxu1 }
 0x1fe   :  { %v1216_v52 = vpack.c.bf16 %v519_v43, %v515_v42  ;;  %v522_v53 = vmax.f32 %v498_v50, 0.0 }
 0x1ff   :  { %v1224_v54 = vpack.c.bf16 %v521_v48, %v517_v46  ;;  %v1214_v55 = vpack.c.bf16 %v520_v49, %v516_v47  ;;  %v407_v56 = vpop.f32.mrb[18].mxu0 }
 0x200   :  { %v1222_v57 = vpack.c.bf16 %v522_v53, %v518_v51  ;;  %v502_v58 = vpop.f32.mrb[18].mxu1  ;;  %v409_v59 = vpop.f32.mrb[19].mxu0  ;;  %v523_v63 = vmax.f32 %v407_v56, 0.0  ;;  %v968_v53 = vld [vmem:[#allocation5 + $0x78] sm:$0xf] }
 0x201   :  { %v524_v60 = vmax.f32 %v409_v59, 0.0  ;;  %v504_v61 = vpop.f32.mrb[19].mxu1  ;;  %1215 = vmatprep.subr.bf16.mxu0 %v1214_v55  ;;  %v525_v3 = vmax.f32 %v502_v58, 0.0 }
 0x202   :  { %v526_v62 = vmax.f32 %v504_v61, 0.0  ;;  %1223 = vmatprep.subr.bf16.mxu1 %v1222_v57  ;;  %1217 = vmatpush1.bf16.msra.mxu0 %v1216_v52 }
 0x203   :  { %1225 = vmatpush1.bf16.msra.mxu1 %v1224_v54  ;;  %766 = vmatprep.subr.mxu0 %v524_v60 }
 0x204   :  { %861 = vmatprep.subr.mxu1 %v526_v62 }
 0x206   :  { %767 = vmatpush1.msra.mxu0 %v523_v63 }
 0x207   :  { %862 = vmatpush1.msra.mxu1 %v525_v3  ;;  %1174 = vmatmul.mubr.msk.f32.vlgmr.msra.gmra.mrb[20].mxu0 %vm301_vm2, %v527_v1 }
 0x208   :  { %1179 = vmatmul.mubr.msk.f32.vlgmr.msra.gmra.mrb[20].mxu1 %vm301_vm2, %v527_v1  ;;  %828 = vmatprep.mubr.f32.mxu0 %v1348_v0 }
 0x209   :  { %923 = vmatprep.mubr.f32.mxu1 %v1348_v0 }
 0x20b   :  { %1175 = vmatmul.mubr.msk.f32.gmra.mrb[22].mxu0 %vm301_vm2, %v528_v4 }
 0x20c   :  { %1180 = vmatmul.mubr.msk.f32.gmra.mrb[22].mxu1 %vm301_vm2, %v528_v4  ;;  %834 = vmatprep.mubr.f32.mxu0 %v1348_v0 }
 0x20d   :  { %929 = vmatprep.mubr.f32.mxu1 %v1348_v0 }
 0x20f   :  { %1176 = vmatmul.mubr.msk.f32.gmra.mrb[24].mxu0 %vm301_vm2, %v529_v6 }
 0x210   :  { %1181 = vmatmul.mubr.msk.f32.gmra.mrb[24].mxu1 %vm301_vm2, %v529_v6  ;;  %840 = vmatprep.mubr.f32.mxu0 %v1348_v0 }
 0x211   :  { %935 = vmatprep.mubr.f32.mxu1 %v1348_v0 }
 0x213   :  { %1177 = vmatmul.mubr.msk.f32.gmra.mrb[26].mxu0 %vm301_vm2, %v530_v8 }
 0x214   :  { %1182 = vmatmul.mubr.msk.f32.gmra.mrb[26].mxu1 %vm301_vm2, %v530_v8  ;;  %846 = vmatprep.mubr.f32.mxu0 %v1348_v0 }
 0x215   :  { %941 = vmatprep.mubr.f32.mxu1 %v1348_v0 }
 0x217   :  { %1178 = vmatmul.mubr.msk.f32.gmra.mrb[28].mxu0 %vm301_vm2, %v531_v9 }
 0x218   :  { %1183 = vmatmul.mubr.msk.f32.gmra.mrb[28].mxu1 %vm301_vm2, %v531_v9  ;;  %1036 = vmatprep.mubr.f32.mxu0 %v1348_v0 }
 0x219   :  { %1107 = vmatprep.mubr.f32.mxu1 %v1348_v0 }
 0x2da   :  { %v824_v10 = vpop.f32.mrb[20].mxu0 }
 0x2db   :  { %v919_v12 = vpop.f32.mrb[20].mxu1  ;;  %v826_v13 = vpop.f32.mrb[21].mxu0  ;;  %v948_v7 = vmax.f32 %v824_v10, 0.0 }
 0x2dc   :  { %v921_v2 = vpop.f32.mrb[21].mxu1  ;;  %v950_v16 = vmax.f32 %v919_v12, 0.0  ;;  %v949_v17 = vmax.f32 %v826_v13, 0.0 }
 0x2dd   :  { %v951_v21 = vmax.f32 %v921_v2, 0.0 }
 0x2de   :  { %v830_v5 = vpop.f32.mrb[22].mxu0 }
 0x2df   :  { %v952_v11 = vmax.f32 %v830_v5, 0.0  ;;  %v925_v14 = vpop.f32.mrb[22].mxu1  ;;  %v832_v15 = vpop.f32.mrb[23].mxu0 }
 0x2e0   :  { %v954_v18 = vmax.f32 %v925_v14, 0.0  ;;  %v953_v19 = vmax.f32 %v832_v15, 0.0  ;;  %v927_v20 = vpop.f32.mrb[23].mxu1 }
 0x2e1   :  { %v1228_v22 = vpack.c.bf16 %v952_v11, %v948_v7  ;;  %v955_v23 = vmax.f32 %v927_v20, 0.0 }
 0x2e2   :  { %v1236_v24 = vpack.c.bf16 %v954_v18, %v950_v16  ;;  %v1226_v25 = vpack.c.bf16 %v953_v19, %v949_v17  ;;  %v836_v0 = vpop.f32.mrb[24].mxu0 }
 0x2e3   :  { %v1234_v26 = vpack.c.bf16 %v955_v23, %v951_v21  ;;  %v931_v27 = vpop.f32.mrb[24].mxu1  ;;  %v838_v28 = vpop.f32.mrb[25].mxu0  ;;  %v956_v31 = vmax.f32 %v836_v0, 0.0 }
 0x2e4   :  { %v933_v29 = vpop.f32.mrb[25].mxu1  ;;  %1227 = vmatprep.subr.bf16.mxu0 %v1226_v25  ;;  %v958_v35 = vmax.f32 %v931_v27, 0.0  ;;  %v957_v36 = vmax.f32 %v838_v28, 0.0 }
 0x2e5   :  { %1235 = vmatprep.subr.bf16.mxu1 %v1234_v26  ;;  %1229 = vmatpush1.bf16.msra.mxu0 %v1228_v22  ;;  %v959_v40 = vmax.f32 %v933_v29, 0.0 }
 0x2e6   :  { %1237 = vmatpush1.bf16.msra.mxu1 %v1236_v24  ;;  %v842_v30 = vpop.f32.mrb[26].mxu0 }
 0x2e7   :  { %v960_v32 = vmax.f32 %v842_v30, 0.0  ;;  %v937_v33 = vpop.f32.mrb[26].mxu1  ;;  %v844_v34 = vpop.f32.mrb[27].mxu0 }
 0x2e8   :  { %v962_v37 = vmax.f32 %v937_v33, 0.0  ;;  %v961_v38 = vmax.f32 %v844_v34, 0.0  ;;  %v939_v39 = vpop.f32.mrb[27].mxu1 }
 0x2e9   :  { %v1232_v41 = vpack.c.bf16 %v960_v32, %v956_v31  ;;  %v963_v42 = vmax.f32 %v939_v39, 0.0 }
 0x2ea   :  { %v1240_v43 = vpack.c.bf16 %v962_v37, %v958_v35  ;;  %v1230_v44 = vpack.c.bf16 %v961_v38, %v957_v36  ;;  %v848_v45 = vpop.f32.mrb[28].mxu0 }
 0x2eb   :  { %v1238_v46 = vpack.c.bf16 %v963_v42, %v959_v40  ;;  %v943_v47 = vpop.f32.mrb[28].mxu1  ;;  %v850_v48 = vpop.f32.mrb[29].mxu0  ;;  %v964_v52 = vmax.f32 %v848_v45, 0.0 }
 0x2ec   :  { %v965_v49 = vmax.f32 %v850_v48, 0.0  ;;  %v945_v50 = vpop.f32.mrb[29].mxu1  ;;  %1231 = vmatprep.subr.bf16.mxu0 %v1230_v44  ;;  %v966_v54 = vmax.f32 %v943_v47, 0.0 }
 0x2ed   :  { %v967_v51 = vmax.f32 %v945_v50, 0.0  ;;  %1239 = vmatprep.subr.bf16.mxu1 %v1238_v46  ;;  %1233 = vmatpush1.bf16.msra.mxu0 %v1232_v41 }
 0x2ee   :  { %1241 = vmatpush1.bf16.msra.mxu1 %v1240_v43  ;;  %980 = vmatprep.subr.mxu0 %v965_v49 }
 0x2ef   :  { %1051 = vmatprep.subr.mxu1 %v967_v51 }
 0x2f1   :  { %981 = vmatpush1.msra.mxu0 %v964_v52 }
 0x2f2   :  { %1052 = vmatpush1.msra.mxu1 %v966_v54  ;;  %1184 = vmatmul.mubr.msk.f32.vlgmr.msra.gmra.mrb[30].mxu0 %vm301_vm2, %v968_v53 }
 0x2f3   :  { %1185 = vmatmul.mubr.msk.f32.vlgmr.msra.gmra.mrb[30].mxu1 %vm301_vm2, %v968_v53 }
 0x3c5   :  { %v1038_v55 = vpop.f32.mrb[30].mxu0 }
 0x3c6   :  { %v1109_v56 = vpop.f32.mrb[30].mxu1  ;;  %v1040_v57 = vpop.f32.mrb[31].mxu0 }
 0x3c7   :  { %v1118_v58 = vcombine.low %v1038_v55, %v1040_v57  ;;  %v1111_v59 = vpop.f32.mrb[31].mxu1 }
 0x3c8   :  { %v1119_v60 = vcombine.low %v1109_v56, %v1111_v59 }
 0x3c9   :  { %1122 = vst [vmem:[#allocation7] sm:$0xff] %v1118_v58 }
 0x3ca   :  { %1123 = vst [vmem:[#allocation7 + $0x8] sm:$0xff] %v1119_v60 }
 0x3cb   :  { %1325 = shalt.err (!%p1322_p6)
}
 0x3cc   :  { %s1326_s12 = scalar_lea.hbm %s1503_s2, 256 }
 0x3cd   :  { %p1327_p7 = scmp.ne.s32.totalorder %s1503_s2, %s1326_s12  ;;  %p1330_p8 = scmp.lt.u32.totalorder %s1326_s12, %s1503_s2 }
 0x3cf   :  { %p1332_p9 = pnand %p1330_p8, %p1327_p7 }
 0x3d1   :  { %1335 = shalt.err (!%p1332_p9)
}
 0x3d2   :  { %1133 = dma.vmem_to_hbm [thread:$0]  %s1131_s8, 256, %s1503_s2, [#allocation4]  }
 0x3d3   :  { %1340 = dma.done.wait [#allocation4], 256  }
 0x3d4   :  { %1341 = vsyncadd [#allocation4], 4294967040 }
 0x3d5   :  { %1137 = vsyncpa [#allocation3], 1 }
 0x3d6   :  { %1138 = vsyncpa [#allocation6], 1 }
 0x3d7   :  { %1139 = vsyncpa [#allocation4], 1 }

</bundles_post_ra>
